<compile_context>
chip_gen: v5e
topology: v5e:2x2
jax: 0.10.0
libtpu: 0.0.40
codegen_flags: <defaults>
</compile_context>

<pallas_src>
import jax
import jax.numpy as jnp
from jax.experimental import pallas as pl
from jax.experimental.pallas import tpu as pltpu


def _round_up(x: int, m: int) -> int:
    return (x + m - 1) // m * m


def _round_down(x: int, m: int) -> int:
    return (x // m) * m


def _vmem_capacity_bytes() -> int:
    """Physical VMEM per core; conservative fallback = v7x (64 MiB)."""
    try:
        cap = getattr(pltpu.get_tpu_info(), "vmem_capacity_bytes", None)
        if cap:
            return int(cap)
    except Exception:
        pass
    return 64 * 1024 * 1024


# --------------------------------------------------------------------------- #
# Kernels
# --------------------------------------------------------------------------- #
def _glove_dense_kernel(u_emb_ref, v_emb_ref, bias_ref, out_ref, dot_row_ref):
    """Grid = (j: column tiles [outer, parallel], i: row tiles [inner, arbitrary]).

    u_emb_ref / v_emb_ref : (TN, E)  gathered embeddings for this column tile
    bias_ref              : (TM, 1)  pre-summed u_bias + v_bias for this row tile
    out_ref               : (TM, TN) output tile
    dot_row_ref           : (8, TN)  VMEM scratch holding the per-column dots
    """
    # Dot products only depend on the column tile: compute once per j (i == 0)
    # and reuse across every row tile of that column tile.  Requires the inner
    # (row) axis to stay "arbitrary" (sequential).
    @pl.when(pl.program_id(1) == 0)
    def _():
        prod = u_emb_ref[...] * v_emb_ref[...]                  # (TN, E), VPU
        ones = jnp.ones((8, prod.shape[1]), dtype=prod.dtype)   # (8, E)
        # ones @ prod^T -> (8, TN): the E-reduction runs on the (otherwise idle)
        # MXU and the result lands lane-major, so no in-kernel transpose.
        # TODO(synk): for very large E, block E with an accumulating loop (and
        # consider higher matmul precision) if exact f32-sum parity matters.
        dot_row_ref[...] = jax.lax.dot_general(
            ones, prod,
            dimension_numbers=(((1,), (1,)), ((), ())),
            preferred_element_type=jnp.float32,
        )

    # out[i, j] = dot_j + (u_bias_i + v_bias_i): a single broadcast add per tile.
    out_ref[...] = (dot_row_ref[0:1, :] + bias_ref[...]).astype(out_ref.dtype)


def _glove_dot_kernel(u_emb_ref, v_emb_ref, dot_ref):
    """Rank-1 factor kernel: per-column dot products as a lane-major (1, TN) tile."""
    prod = u_emb_ref[...] * v_emb_ref[...]
    ones = jnp.ones((8, prod.shape[1]), dtype=prod.dtype)
    d = jax.lax.dot_general(ones, prod,
                            dimension_numbers=(((1,), (1,)), ((), ())),
                            preferred_element_type=jnp.float32)
    dot_ref[...] = d[0:1, :]


# --------------------------------------------------------------------------- #
# Tile geometry
# --------------------------------------------------------------------------- #
def _geometry(B: int, E: int, tile_m: int, tile_n: int, vmem_cap: int):
    """Pick (Br, Bc, TM, TN) so blocks never exceed the (padded) array extents
    and the double-buffered working set fits 3/4 of this generation's VMEM."""
    # Column (lane) axis: TN multiple of 128.
    if B >= 128:
        Bc, TN = B, min(tile_n, _round_down(B, 128))     # ragged edge masked
    else:
        Bc, TN = 128, 128                                 # pad up to one lane tile
    # v7x: keep >= 2 column tiles so the "parallel" axis feeds both TensorCores.
    if Bc >= 256:
        TN = min(TN, max(128, _round_down(Bc // 2, 128)))
    # Row (sublane) axis: TM multiple of 8.
    if B >= 8:
        Br, TM = B, min(tile_m, _round_down(B, 8))
    else:
        Br, TM = 8, 8

    budget = (vmem_cap * 3) // 4

    def working_set(tm, tn):
        emb = 2 * 2 * tn * E * 4                 # u_emb + v_emb, double-buffered
        out = 2 * tm * tn * 4                    # output tile, double-buffered
        scr = 8 * tn * 4                         # dot_row scratch
        bias = 2 * _round_up(tm, 8) * 512        # (tm, 1) block lane-padded to (8,128)
        return emb + out + scr + bias

    while working_set(TM, TN) > budget:
        if TM > 8:
            TM = max(8, _round_up(TM // 2, 8))
        elif TN > 128:
            TN = max(128, _round_down(TN // 2, 128))
        else:
            break
    return Br, Bc, TM, TN, working_set(TM, TN)


# --------------------------------------------------------------------------- #
# Wrappers
# --------------------------------------------------------------------------- #
def glove_forward(word_u, word_v, in_embed, in_bias, out_embed, out_bias,
                  *, tile_m: int = 512, tile_n: int = 1024,
                  out_dtype=jnp.float32):
    """Pallas implementation of GloVeClass.forward.

    Faithfully reproduces the PyTorch broadcast: out[i, j] = dot_j + u_b_i + v_b_i
    (squeezed when B == 1).  Pass out_dtype=jnp.bfloat16 to halve the dominant
    HBM store traffic when full f32 output is not required.
    """
    B = int(word_u.shape[0])
    E = int(in_embed.shape[1])
    f32 = jnp.float32

    # Embedding lookups are pure indexing glue (XLA gather, no transpose); the
    # two bias gathers are pre-summed so the kernel sees one (B, 1) bias stream.
    u_emb = in_embed[word_u].astype(f32)                           # (B, E)
    v_emb = out_embed[word_v].astype(f32)                          # (B, E)
    bias_sum = (in_bias[word_u] + out_bias[word_v]).astype(f32)    # (B, 1)

    vmem_cap = _vmem_capacity_bytes()
    Br, Bc, TM, TN, ws = _geometry(B, E, tile_m, tile_n, vmem_cap)

    # Only batches below the (8, 128) grain get padded (a few KiB); larger B
    # uses masked ragged edge tiles directly on the (B, B) output, so there is
    # no post-kernel slice/copy pass over the dominant tensor.
    if Bc > B:
        u_emb = jnp.pad(u_emb, ((0, Bc - B), (0, 0)))
        v_emb = jnp.pad(v_emb, ((0, Bc - B), (0, 0)))
    if Br > B:
        bias_sum = jnp.pad(bias_sum, ((0, Br - B), (0, 0)))

    grid = (pl.cdiv(Bc, TN), pl.cdiv(Br, TM))    # (columns outer, rows inner)
    vmem_limit = int(min((vmem_cap * 3) // 4, max(32 << 20, ws + (8 << 20))))

    out = pl.pallas_call(
        _glove_dense_kernel,
        out_shape=jax.ShapeDtypeStruct((Br, Bc), out_dtype),
        grid=grid,
        in_specs=[
            pl.BlockSpec((TN, E), lambda j, i: (j, 0)),   # u_emb: per column tile
            pl.BlockSpec((TN, E), lambda j, i: (j, 0)),   # v_emb: per column tile
            pl.BlockSpec((TM, 1), lambda j, i: (i, 0)),   # bias:  per row tile
        ],
        out_specs=pl.BlockSpec((TM, TN), lambda j, i: (i, j)),
        scratch_shapes=[pltpu.VMEM((8, TN), jnp.float32)],
        compiler_params=pltpu.CompilerParams(
            # Outer (column) axis is independent -> megacore-sharded on v7x.
            # Inner (row) axis reuses the per-column dot-row scratch -> arbitrary.
            dimension_semantics=("parallel", "arbitrary"),
            vmem_limit_bytes=vmem_limit,
        ),
    )(u_emb, v_emb, bias_sum)

    if Br > B or Bc > B:          # only for sub-grain batches (tiny slice)
        out = out[:B, :B]
    if out.shape[1] == 1:         # mimic torch .squeeze(1)
        out = jnp.squeeze(out, axis=1)
    return out


def glove_forward_factors(word_u, word_v, in_embed, in_bias, out_embed, out_bias,
                          *, tile_n: int = 2048):
    """Rank-1 factors of the forward result: (dot, bias) with
    out[i, j] == dot[j] + bias[i].  O(B) output instead of O(B^2) bytes — use
    when downstream can consume the factored form (the GloVe loss only needs
    the diagonal dot[i] + bias[i])."""
    B = int(word_u.shape[0])
    E = int(in_embed.shape[1])
    f32 = jnp.float32

    u_emb = in_embed[word_u].astype(f32)                             # (B, E)
    v_emb = out_embed[word_v].astype(f32)                            # (B, E)
    bias = (in_bias[word_u] + out_bias[word_v]).astype(f32)[:, 0]    # (B,)

    vmem_cap = _vmem_capacity_bytes()
    Bc = B if B >= 128 else 128
    TN = min(tile_n, _round_down(Bc, 128))
    while (2 * 2 * TN * E * 4 + 2 * 8 * TN * 4) > (vmem_cap * 3) // 4 and TN > 128:
        TN = max(128, _round_down(TN // 2, 128))
    if Bc > B:
        u_emb = jnp.pad(u_emb, ((0, Bc - B), (0, 0)))
        v_emb = jnp.pad(v_emb, ((0, Bc - B), (0, 0)))

    dot = pl.pallas_call(
        _glove_dot_kernel,
        out_shape=jax.ShapeDtypeStruct((1, Bc), jnp.float32),
        grid=(pl.cdiv(Bc, TN),),
        in_specs=[pl.BlockSpec((TN, E), lambda j: (j, 0)),
                  pl.BlockSpec((TN, E), lambda j: (j, 0))],
        out_specs=pl.BlockSpec((1, TN), lambda j: (0, j)),
        compiler_params=pltpu.CompilerParams(
            dimension_semantics=("parallel",)),
    )(u_emb, v_emb)
    return dot[0, :B], bias


# --------------------------------------------------------------------------- #
# Self-test
# --------------------------------------------------------------------------- #
def xavier_normal(key, shape):
    fan_out, fan_in = shape  # nn.Embedding weight: (num_embeddings, embed_dim)
    std = (2.0 / (fan_in + fan_out)) ** 0.5
    return std * jax.random.normal(key, shape, dtype=jnp.float32)


if __name__ == "__main__":
    # Small synthetic configuration consistent with the module's __init__.
    UNIQUE_WORD_SIZE = 50   # vocabulary size
    EMBED_SIZE = 32         # embedding dim
    BATCH = 8               # batch of (word_u, word_v) index pairs

    key = jax.random.PRNGKey(0)
    k_in_e, k_in_b, k_out_e, k_out_b, k_u, k_v = jax.random.split(key, 6)

    in_embed = xavier_normal(k_in_e, (UNIQUE_WORD_SIZE, EMBED_SIZE))
    in_bias = xavier_normal(k_in_b, (UNIQUE_WORD_SIZE, 1))
    out_embed = xavier_normal(k_out_e, (UNIQUE_WORD_SIZE, EMBED_SIZE))
    out_bias = xavier_normal(k_out_b, (UNIQUE_WORD_SIZE, 1))

    word_u = jax.random.randint(k_u, (BATCH,), 0, UNIQUE_WORD_SIZE, dtype=jnp.int32)
    word_v = jax.random.randint(k_v, (BATCH,), 0, UNIQUE_WORD_SIZE, dtype=jnp.int32)

    out = glove_forward(word_u, word_v, in_embed, in_bias, out_embed, out_bias)
    out = jax.block_until_ready(out)

    # Pure-JAX reference of the exact PyTorch broadcasting semantics.
    dot_ref = jnp.sum(in_embed[word_u] * out_embed[word_v], axis=1)     # (B,)
    ref = dot_ref[None, :] + in_bias[word_u] + out_bias[word_v]         # (B, B)
    assert out.shape == (BATCH, BATCH), out.shape
    assert jnp.allclose(out, ref, atol=1e-5, rtol=1e-5)

    # Rank-1 factored path (O(B) output) must reconstruct the same result.
    dot_f, bias_f = glove_forward_factors(word_u, word_v, in_embed, in_bias,
                                          out_embed, out_bias)
    dot_f = jax.block_until_ready(dot_f)
    assert jnp.allclose(dot_f[None, :] + bias_f[:, None], ref, atol=1e-5, rtol=1e-5)

    print("KERNEL_OK")
</pallas_src>

<mosaic_0001>
module attributes {stable_mosaic.version = 11 : i64} {
  func.func @_glove_dense_kernel(%arg0: i32, %arg1: i32, %arg2: memref<128x32xf32, #tpu.memory_space<vmem>>, %arg3: memref<128x32xf32, #tpu.memory_space<vmem>>, %arg4: memref<8x1xf32, #tpu.memory_space<vmem>>, %arg5: memref<8x128xf32, #tpu.memory_space<vmem>>, %arg6: memref<8x128xf32, #tpu.memory_space<vmem>>) attributes {dimension_semantics = [#tpu.dimension_semantics<parallel>, #tpu.dimension_semantics<arbitrary>], iteration_bounds = array<i64: 1, 1>, scalar_prefetch = 0 : i64, scratch_operands = 1 : i64, tpu.core_type = #tpu.core_type<tc>, window_params = [{transform_indices = @transform_0, window_bounds = array<i64: 128, 32>}, {transform_indices = @transform_1, window_bounds = array<i64: 128, 32>}, {transform_indices = @transform_2, window_bounds = array<i64: 8, 1>}, {transform_indices = @transform_3, window_bounds = array<i64: 8, 128>}]} {
    %c0_i32 = arith.constant 0 : i32
    %0 = arith.cmpi eq, %arg1, %c0_i32 : i32
    %1 = arith.extui %0 : i1 to i32
    %c0_i32_0 = arith.constant 0 : i32
    %2 = arith.cmpi ne, %1, %c0_i32_0 : i32
    scf.if %2 {
      %c0_6 = arith.constant 0 : index
      %c0_7 = arith.constant 0 : index
      %9 = vector.load %arg2[%c0_6, %c0_7] : memref<128x32xf32, #tpu.memory_space<vmem>>, vector<128x32xf32>
      %c0_8 = arith.constant 0 : index
      %c0_9 = arith.constant 0 : index
      %10 = vector.load %arg3[%c0_8, %c0_9] : memref<128x32xf32, #tpu.memory_space<vmem>>, vector<128x32xf32>
      %11 = arith.mulf %9, %10 : vector<128x32xf32>
      %cst = arith.constant 1.000000e+00 : f32
      %12 = vector.broadcast %cst : f32 to vector<8x32xf32>
      %cst_10 = arith.constant dense<0.000000e+00> : vector<8x128xf32>
      %13 = tpu.matmul %12, %11, %cst_10 {dimension_numbers = #tpu.dot_dimension_numbers<[1], [1], [0], [0], [0, 0, 1, 0], [], []>} : vector<8x32xf32>, vector<128x32xf32>, vector<8x128xf32> -> vector<8x128xf32>
      %c0_11 = arith.constant 0 : index
      %c0_12 = arith.constant 0 : index
      %14 = vector.load %arg6[%c0_11, %c0_12] : memref<8x128xf32, #tpu.memory_space<vmem>>, vector<8x128xf32>
      tpu.vector_store %arg6[%c0_11, %c0_12], %13 {strides = array<i32>} : memref<8x128xf32, #tpu.memory_space<vmem>>, vector<8x128xf32>,
    } else {
    }
    %c0 = arith.constant 0 : index
    %c0_1 = arith.constant 0 : index
    %3 = vector.load %arg6[%c0, %c0_1] : memref<8x128xf32, #tpu.memory_space<vmem>>, vector<1x128xf32>
    %c0_2 = arith.constant 0 : index
    %c0_3 = arith.constant 0 : index
    %4 = vector.load %arg4[%c0_2, %c0_3] : memref<8x1xf32, #tpu.memory_space<vmem>>, vector<8x1xf32>
    %5 = vector.broadcast %3 : vector<1x128xf32> to vector<8x128xf32>
    %6 = vector.broadcast %4 : vector<8x1xf32> to vector<8x128xf32>
    %7 = arith.addf %5, %6 : vector<8x128xf32>
    %c0_4 = arith.constant 0 : index
    %c0_5 = arith.constant 0 : index
    %8 = vector.load %arg5[%c0_4, %c0_5] : memref<8x128xf32, #tpu.memory_space<vmem>>, vector<8x128xf32>
    tpu.vector_store %arg5[%c0_4, %c0_5], %7 {strides = array<i32>} : memref<8x128xf32, #tpu.memory_space<vmem>>, vector<8x128xf32>,
    return
  }
  func.func @transform_0(%arg0: i32, %arg1: i32) -> (i32, i32) {
    %c0_i32 = arith.constant 0 : i32
    %c0_i32_0 = arith.constant 0 : i32
    return %arg0, %c0_i32 : i32, i32
  }
  func.func @transform_1(%arg0: i32, %arg1: i32) -> (i32, i32) {
    %c0_i32 = arith.constant 0 : i32
    %c0_i32_0 = arith.constant 0 : i32
    return %arg0, %c0_i32 : i32, i32
  }
  func.func @transform_2(%arg0: i32, %arg1: i32) -> (i32, i32) {
    %c0_i32 = arith.constant 0 : i32
    %c0_i32_0 = arith.constant 0 : i32
    return %arg1, %c0_i32 : i32, i32
  }
  func.func @transform_3(%arg0: i32, %arg1: i32) -> (i32, i32) {
    %c0_i32 = arith.constant 0 : i32
    return %arg1, %arg0 : i32, i32
  }
}

</mosaic_0001>

<bundles_post_ra>
// kernel: tpu_custom_call.1
= control target key start
LH: loop header
LB: loop body
LE: loop exit
PB: predicated region body
PF: predicated region fallthrough
CT: control target
= control target key end

     0   :  { %vm67_vm0 = vcmask 261120   ;;  %s356_s0 = inlined_call_operand.vmem [shape: f32[128,32], index: 0, kind: input, shape index: {}]   ;;  %s357_s1 = inlined_call_operand.vmem [shape: f32[128,32], index: 1, kind: input, shape index: {}]   ;;  %s358_s2 = inlined_call_operand.vmem [shape: f32[8,1], index: 2, kind: input, shape index: {}]   ;;  %s359_s3 = inlined_call_operand.hbm [shape: f32[8,128], index: 3, kind: output, shape index: {}]  }
   0x1   :  { %v34_v0 = vld [vmem:[%s356_s0 + $0x78] sm:$0xff]  ;;  %v33_v2 = vld [vmem:[%s356_s0 + $0x70] sm:$0xff]  ;;  %v32_v6 = vld [vmem:[%s356_s0 + $0x68] sm:$0xff] }
   0x2   :  { %v50_v1 = vld [vmem:[%s357_s1 + $0x78] sm:$0xff]  ;;  %v49_v4 = vld [vmem:[%s357_s1 + $0x70] sm:$0xff]  ;;  %v48_v7 = vld [vmem:[%s357_s1 + $0x68] sm:$0xff] }
   0x3   :  { %v66_v3 = vmul.f32 %v50_v1, %v34_v0  ;;  %v65_v5 = vmul.f32 %v49_v4, %v33_v2 }
   0x5   :  { %166 = vmatpush.xpose.msk.msra.mxu0 %vm67_vm0, %v66_v3 }
   0x6   :  { %8 = vsyncpa [#allocation4], 0  ;;  %v64_v8 = vmul.f32 %v48_v7, %v32_v6  ;;  %v31_v9 = vld [vmem:[%s356_s0 + $0x60] sm:$0xff]  ;;  %v30_v12 = vld [vmem:[%s356_s0 + $0x58] sm:$0xff]  ;;  %v214_v31 = vmov 0   ;;  %v215_v50 = vmov 1.0  }
   0x7   :  { %v47_v10 = vld [vmem:[%s357_s1 + $0x60] sm:$0xff]  ;;  %v46_v13 = vld [vmem:[%s357_s1 + $0x58] sm:$0xff]  ;;  %v29_v15 = vld [vmem:[%s356_s0 + $0x50] sm:$0xff]  ;;  %186 = vset.pattern.permute.xlu0 %v214_v31  ;;  %s216_s23 = smov [#allocation3]  }
   0x8   :  { %v63_v11 = vmul.f32 %v47_v10, %v31_v9  ;;  %v62_v14 = vmul.f32 %v46_v13, %v30_v12  ;;  %v45_v16 = vld [vmem:[%s357_s1 + $0x50] sm:$0xff]  ;;  %v28_v18 = vld [vmem:[%s356_s0 + $0x48] sm:$0xff]  ;;  %v27_v21 = vld [vmem:[%s356_s0 + $0x40] sm:$0xff]  ;;  %s155_s24 = sshll.u32 %s216_s23, 4  ;;  %s156_s24 = int_to_ptr.vmem [resolvable:$true] %s155_s24 }
   0x9   :  { %167 = vmatpush.xpose.msk.msra.mxu0 %vm67_vm0, %v65_v5  ;;  %v61_v17 = vmul.f32 %v45_v16, %v29_v15  ;;  %v44_v19 = vld [vmem:[%s357_s1 + $0x48] sm:$0xff]  ;;  %v43_v22 = vld [vmem:[%s357_s1 + $0x40] sm:$0xff]  ;;  %v26_v24 = vld [vmem:[%s356_s0 + $0x38] sm:$0xff] }
   0xa   :  { %v60_v20 = vmul.f32 %v44_v19, %v28_v18  ;;  %v59_v23 = vmul.f32 %v43_v22, %v27_v21  ;;  %v42_v25 = vld [vmem:[%s357_s1 + $0x38] sm:$0xff]  ;;  %v25_v27 = vld [vmem:[%s356_s0 + $0x30] sm:$0xff]  ;;  %v141_v29 = vld [vmem:[%s358_s2] sm:$0xff] }
   0xb   :  { %v58_v26 = vmul.f32 %v42_v25, %v26_v24  ;;  %v41_v28 = vld [vmem:[%s357_s1 + $0x30] sm:$0xff]  ;;  %v24_v32 = vld [vmem:[%s356_s0 + $0x28] sm:$0xff]  ;;  %145 = vperm.xlu0 %186, %v141_v29   ;;  %v23_v35 = vld [vmem:[%s356_s0 + $0x20] sm:$0xff] }
   0xc   :  { %v57_v30 = vmul.f32 %v41_v28, %v25_v27  ;;  %v40_v33 = vld [vmem:[%s357_s1 + $0x28] sm:$0xff]  ;;  %v39_v36 = vld [vmem:[%s357_s1 + $0x20] sm:$0xff]  ;;  %v22_v38 = vld [vmem:[%s356_s0 + $0x18] sm:$0xff] }
   0xd   :  { %168 = vmatpush.xpose.msk.msra.mxu0 %vm67_vm0, %v64_v8  ;;  %v56_v34 = vmul.f32 %v40_v33, %v24_v32  ;;  %v55_v37 = vmul.f32 %v39_v36, %v23_v35  ;;  %v38_v39 = vld [vmem:[%s357_s1 + $0x18] sm:$0xff]  ;;  %v21_v41 = vld [vmem:[%s356_s0 + $0x10] sm:$0xff]  ;;  %v20_v44 = vld [vmem:[%s356_s0 + $0x8] sm:$0xff] }
   0xe   :  { %v54_v40 = vmul.f32 %v38_v39, %v22_v38  ;;  %v37_v42 = vld [vmem:[%s357_s1 + $0x10] sm:$0xff]  ;;  %v36_v45 = vld [vmem:[%s357_s1 + $0x8] sm:$0xff]  ;;  %v19_v47 = vld [vmem:[%s356_s0] sm:$0xff]  ;;  %s157_s0 = sshll.u32 %s359_s3, 4  ;;  %s158_s0 = int_to_ptr.hbm [resolvable:$true] %s157_s0 }
   0xf   :  { %v53_v43 = vmul.f32 %v37_v42, %v21_v41  ;;  %v52_v46 = vmul.f32 %v36_v45, %v20_v44  ;;  %v35_v48 = vld [vmem:[%s357_s1] sm:$0xff] }
  0x10   :  { %v51_v49 = vmul.f32 %v35_v48, %v19_v47 }
  0x11   :  { %169 = vmatpush.xpose.msk.msra.mxu0 %vm67_vm0, %v63_v11 }
  0x15   :  { %170 = vmatpush.xpose.msk.msra.mxu0 %vm67_vm0, %v62_v14 }
  0x19   :  { %171 = vmatpush.xpose.msk.msra.mxu0 %vm67_vm0, %v61_v17 }
  0x1d   :  { %172 = vmatpush.xpose.msk.msra.mxu0 %vm67_vm0, %v60_v20 }
  0x21   :  { %173 = vmatpush.xpose.msk.msra.mxu0 %vm67_vm0, %v59_v23 }
  0x25   :  { %174 = vmatpush.xpose.msk.msra.mxu0 %vm67_vm0, %v58_v26 }
  0x29   :  { %175 = vmatpush.xpose.msk.msra.mxu0 %vm67_vm0, %v57_v30 }
  0x2d   :  { %176 = vmatpush.xpose.msk.msra.mxu0 %vm67_vm0, %v56_v34 }
  0x31   :  { %177 = vmatpush.xpose.msk.msra.mxu0 %vm67_vm0, %v55_v37 }
  0x35   :  { %178 = vmatpush.xpose.msk.msra.mxu0 %vm67_vm0, %v54_v40 }
  0x39   :  { %179 = vmatpush.xpose.msk.msra.mxu0 %vm67_vm0, %v53_v43 }
  0x3d   :  { %180 = vmatpush.xpose.msk.msra.mxu0 %vm67_vm0, %v52_v46 }
  0x41   :  { %181 = vmatpush.xpose.msk.msra.mxu0 %vm67_vm0, %v51_v49 }
  0x44   :  { %182 = vmatmul.msk.f32.vlgmr.msra.gmra.mxu0 %vm67_vm0, %v215_v50 }
  0x7d   :  { %v146_v52 = vpop.permute.xlu0 %145 }
  0xc1   :  { %v136_v51 = vpop.f32.mrf.mxu0 }
  0xc2   :  { %139 = vst [vmem:[#allocation2] sm:$0xff] %v136_v51 }
  0xc9   :  { %v187_v53 = vld [vmem:[#allocation2] ss:$0 sm:$0xff] }
  0xca   :  { %v148_v54 = vadd.f32 %v187_v53, %v146_v52 }
  0xcc   :  { %149 = vst [vmem:[#allocation3] sm:$0xff] %v148_v54 }
  0xcd   :  { %160 = dma.vmem_to_hbm [thread:$0]  %s156_s24, 128, %s158_s0, [#allocation4]  }
  0xce   :  { %212 = dma.done.wait [#allocation4], 128  }
  0xcf   :  { %213 = vsyncadd [#allocation4], 4294967168 }
  0xd0   :  { %165 = vsyncpa [#allocation4], 1 }

</bundles_post_ra>
